<compile_context>
chip_gen: v7x
topology: tpu7x:2x2x1
jax: 0.10.0
libtpu: 0.0.40
codegen_flags: <defaults>
</compile_context>

<pallas_src>
import functools

import jax
import jax.numpy as jnp
import numpy as np
from jax.experimental import pallas as pl
from jax.experimental.pallas import tpu as pltpu


def _cdiv(a, b):
    return -(-a // b)


# ---------------------------------------------------------------------------
# Two-pass path, kernel 1: per-channel sum and sum-of-squares.
# x block: (n_tile, c_tile, hw_tile); outputs: (c_tile, 1) resident
# accumulators (same block for every (ni, hi) grid step -> reduction over the
# trailing "arbitrary" axes).  The ragged last HW tile is masked in-kernel.
# ---------------------------------------------------------------------------
def _stats_kernel(x_ref, sum_ref, sumsq_ref, *, hw, hw_tile, ragged):
    @pl.when((pl.program_id(1) == 0) & (pl.program_id(2) == 0))
    def _():
        sum_ref[...] = jnp.zeros_like(sum_ref)
        sumsq_ref[...] = jnp.zeros_like(sumsq_ref)

    x = x_ref[...]                                        # (n_tile, c_tile, hw_tile)
    if ragged:
        # Edge blocks contain unspecified lanes past HW: zero them before any math.
        lane = jax.lax.broadcasted_iota(jnp.int32, x.shape, 2)
        limit = hw - pl.program_id(2) * hw_tile
        x = jnp.where(lane < limit, x, jnp.zeros((), dtype=x.dtype))

    xf = x.astype(jnp.float32)
    xq = xf * xf
    if xf.shape[0] == 1:
        xs, qs = xf[0], xq[0]                             # (c_tile, hw_tile)
    else:
        xs, qs = jnp.sum(xf, axis=0), jnp.sum(xq, axis=0)  # fold batch (VPU adds)
    sum_ref[...] += jnp.sum(xs, axis=-1, keepdims=True)    # (c_tile, 1)
    sumsq_ref[...] += jnp.sum(qs, axis=-1, keepdims=True)


# ---------------------------------------------------------------------------
# Two-pass path, kernel 2: y = x * scale + shift (scale/shift are (c_tile, 1),
# broadcast along batch and lane axes).  Pure fused multiply-add; the ragged
# last HW tile's invalid lanes are simply not written back by Pallas.
# ---------------------------------------------------------------------------
def _norm_kernel(x_ref, scale_ref, shift_ref, o_ref):
    x = x_ref[...].astype(jnp.float32)                    # (n_tile, c_tile, hw_tile)
    scale = scale_ref[...][None, :, :]                    # (1, c_tile, 1)
    shift = shift_ref[...][None, :, :]
    o_ref[...] = (x * scale + shift).astype(o_ref.dtype)


# ---------------------------------------------------------------------------
# Fused single-pass path: whole (N, c_tile, HW) channel block resident in
# VMEM -> compute stats (centered variance) and normalize from the resident
# copy.  1 HBM read + 1 HBM write of x instead of 2 reads + 1 write.
# ---------------------------------------------------------------------------
def _fused_kernel(x_ref, w_ref, b_ref, y_ref, mean_ref, var_ref, *, inv_n, eps):
    x = x_ref[...].astype(jnp.float32)                    # (N, c_tile, HW)
    mean = jnp.sum(jnp.sum(x, axis=0), axis=-1, keepdims=True) * inv_n   # (c_tile, 1)
    xc = x - mean[None, :, :]
    var = jnp.sum(jnp.sum(xc * xc, axis=0), axis=-1, keepdims=True) * inv_n
    scale = w_ref[...].astype(jnp.float32) * jax.lax.rsqrt(var + eps)    # (c_tile, 1)
    shift = b_ref[...].astype(jnp.float32)
    y_ref[...] = (xc * scale[None, :, :] + shift[None, :, :]).astype(y_ref.dtype)
    mean_ref[...] = mean
    var_ref[...] = var


# ---------------------------------------------------------------------------
# Tiling helpers.
# ---------------------------------------------------------------------------
def _pick_c_tile(C, cap=256):
    """Channel (sublane) tile: multiple of 8 dividing C; prefer >= 2 channel
    blocks so the 'parallel' channel axis feeds both v7x TensorCores."""
    if C % 8 != 0:
        return C                       # full extent is the only legal choice
    limit = min(cap, C // 2) if C >= 16 else C
    best = 0
    for cand in range(8, C + 1, 8):
        if C % cand == 0 and cand <= limit:
            best = cand
    return best if best else C


def _pick_hw_tile(HW, c_tile, itemsize, target_bytes):
    """Lane tile: a multiple of 128, sized by a VMEM byte budget, with the
    128-chunks spread evenly over the HW grid blocks (no HBM padding)."""
    chunks_needed = _cdiv(HW, 128)
    max_chunks = max(1, target_bytes // (c_tile * 128 * itemsize))
    n_blocks = _cdiv(chunks_needed, max_chunks)
    chunks = _cdiv(chunks_needed, n_blocks)
    return 128 * chunks


def _pick_n_tile(N, c_tile, hw_tile, itemsize, target_bytes):
    """Fold batch into the block (divisor of N) until the byte budget is hit —
    keeps blocks near the roofline knee when HW is small."""
    per_n = c_tile * hw_tile * itemsize
    max_n = max(1, target_bytes // per_n)
    best = 1
    for d in range(1, N + 1):
        if N % d == 0 and d <= max_n:
            best = d
    return best


# ---------------------------------------------------------------------------
# Wrapper: training-mode batch norm.
# Returns (y_nchw, new_running_mean, new_running_var).
# ---------------------------------------------------------------------------
def batch_norm_train(x_nchw, weight, bias, running_mean, running_var,
                     momentum=0.1, eps=1e-5, *,
                     target_block_bytes=2 << 20,   # ~roofline knee; safe on v5e/v6e/v7x
                     fuse=None):
    N, C, H, W = x_nchw.shape
    HW = H * W
    x3 = x_nchw.reshape(N, C, HW)                  # native layout, free reshape
    itemsize = jnp.dtype(x_nchw.dtype).itemsize

    c_tile = _pick_c_tile(C)
    n_elems = float(N * HW)
    w2 = weight.reshape(C, 1).astype(jnp.float32)
    b2 = bias.reshape(C, 1).astype(jnp.float32)

    # 32 MiB scoped VMEM: above v5e's 16 MiB default, within v7x's 64 MiB physical.
    VMEM_LIMIT = 32 << 20

    if fuse is None:
        # Fused fast path when one channel block (in f32) is ~<= 2 MiB:
        # footprint (double-buffered in/out + f32 temps) stays well under 32 MiB.
        fuse = (N * c_tile * HW * 4) <= (2 << 20)

    if fuse:
        kern = functools.partial(_fused_kernel, inv_n=1.0 / n_elems, eps=float(eps))
        y3, mean, var_b = pl.pallas_call(
            kern,
            out_shape=(jax.ShapeDtypeStruct((N, C, HW), x_nchw.dtype),
                       jax.ShapeDtypeStruct((C, 1), jnp.float32),
                       jax.ShapeDtypeStruct((C, 1), jnp.float32)),
            grid_spec=pltpu.PrefetchScalarGridSpec(
                num_scalar_prefetch=0,
                grid=(C // c_tile,),
                in_specs=[pl.BlockSpec((N, c_tile, HW), lambda ci: (0, ci, 0)),
                          pl.BlockSpec((c_tile, 1), lambda ci: (ci, 0)),
                          pl.BlockSpec((c_tile, 1), lambda ci: (ci, 0))],
                out_specs=(pl.BlockSpec((N, c_tile, HW), lambda ci: (0, ci, 0)),
                           pl.BlockSpec((c_tile, 1), lambda ci: (ci, 0)),
                           pl.BlockSpec((c_tile, 1), lambda ci: (ci, 0))),
            ),
            compiler_params=pltpu.CompilerParams(
                dimension_semantics=("parallel",),
                vmem_limit_bytes=VMEM_LIMIT),
        )(x3, w2, b2)
    else:
        hw_tile = _pick_hw_tile(HW, c_tile, itemsize, target_block_bytes)
        n_tile = _pick_n_tile(N, c_tile, hw_tile, itemsize, target_block_bytes)
        grid = (C // c_tile, N // n_tile, _cdiv(HW, hw_tile))
        ragged = (HW % hw_tile) != 0

        x_spec = pl.BlockSpec((n_tile, c_tile, hw_tile),
                              lambda ci, ni, hi: (ni, ci, hi))
        cvec_spec = pl.BlockSpec((c_tile, 1), lambda ci, ni, hi: (ci, 0))

        # ---- pass 1: per-channel sums (no HBM padding; mask ragged tile) ----
        stats = functools.partial(_stats_kernel, hw=HW, hw_tile=hw_tile,
                                  ragged=ragged)
        sums, sumsqs = pl.pallas_call(
            stats,
            out_shape=(jax.ShapeDtypeStruct((C, 1), jnp.float32),
                       jax.ShapeDtypeStruct((C, 1), jnp.float32)),
            grid_spec=pltpu.PrefetchScalarGridSpec(
                num_scalar_prefetch=0,
                grid=grid,
                in_specs=[x_spec],
                out_specs=(cvec_spec, cvec_spec),
            ),
            compiler_params=pltpu.CompilerParams(
                dimension_semantics=("parallel", "arbitrary", "arbitrary"),
                vmem_limit_bytes=VMEM_LIMIT),
        )(x3)

        mean = sums / n_elems                            # (C, 1)
        var_b = jnp.maximum(sumsqs / n_elems - mean * mean, 0.0)
        # TODO(synk): E[x^2]-E[x]^2 in f32 can lose precision vs PyTorch's Welford
        # path when |mean| >> std; the fused path uses a centered variance instead.

        # Fold weight / bias / mean / var into scale & shift once (C-sized ops).
        inv = jax.lax.rsqrt(var_b + eps)
        scale = w2 * inv
        shift = b2 - mean * scale

        # ---- pass 2: elementwise normalize (fused multiply-add), unpadded out
        y3 = pl.pallas_call(
            _norm_kernel,
            out_shape=jax.ShapeDtypeStruct((N, C, HW), x_nchw.dtype),
            grid_spec=pltpu.PrefetchScalarGridSpec(
                num_scalar_prefetch=0,
                grid=grid,
                in_specs=[x_spec, cvec_spec, cvec_spec],
                out_specs=x_spec,
            ),
            compiler_params=pltpu.CompilerParams(
                dimension_semantics=("parallel", "parallel", "parallel"),
                vmem_limit_bytes=VMEM_LIMIT),
        )(x3, scale, shift)

    # Running-stat update (tiny C-sized glue; matches F.batch_norm training path).
    var_unbiased = var_b * (n_elems / max(n_elems - 1.0, 1.0))
    new_running_mean = (1.0 - momentum) * running_mean + momentum * mean[:, 0]
    new_running_var = (1.0 - momentum) * running_var + momentum * var_unbiased[:, 0]

    y = y3.reshape(N, C, H, W)
    return y, new_running_mean, new_running_var


# Pure-JAX reference (same math as F.batch_norm with training=True).
def _reference(x, w, b, eps):
    mean = jnp.mean(x, axis=(0, 2, 3), keepdims=True)
    var = jnp.mean((x - mean) ** 2, axis=(0, 2, 3), keepdims=True)
    return (x - mean) / jnp.sqrt(var + eps) * w.reshape(1, -1, 1, 1) + b.reshape(1, -1, 1, 1)


if __name__ == "__main__":
    key = jax.random.PRNGKey(0)
    k1, k2, k3 = jax.random.split(key, 3)
    eps, momentum = 1e-5, 0.1

    # ---- case 1: small activation -> fused single-pass fast path -----------
    N, C, H, W = 2, 4, 16, 16
    x = jax.random.normal(k1, (N, C, H, W), dtype=jnp.float32)
    # Parameter init matching _BatchNorm.reset_parameters():
    #   weight ~ U[0, 1), bias = 0, running_mean = 0, running_var = 1.
    weight = jax.random.uniform(k2, (C,), dtype=jnp.float32)
    bias = jnp.zeros((C,), dtype=jnp.float32)
    running_mean = jnp.zeros((C,), dtype=jnp.float32)
    running_var = jnp.ones((C,), dtype=jnp.float32)

    y, new_rm, new_rv = batch_norm_train(
        x, weight, bias, running_mean, running_var, momentum=momentum, eps=eps)
    jax.block_until_ready((y, new_rm, new_rv))

    y_ref = _reference(x, weight, bias, eps)
    np.testing.assert_allclose(np.asarray(y), np.asarray(y_ref), rtol=1e-4, atol=1e-4)

    n = N * H * W
    mean_ref = jnp.mean(x, axis=(0, 2, 3))
    var_b_ref = jnp.mean((x - mean_ref.reshape(1, C, 1, 1)) ** 2, axis=(0, 2, 3))
    rm_ref = (1.0 - momentum) * running_mean + momentum * mean_ref
    rv_ref = (1.0 - momentum) * running_var + momentum * var_b_ref * n / (n - 1)
    np.testing.assert_allclose(np.asarray(new_rm), np.asarray(rm_ref), rtol=1e-4, atol=1e-5)
    np.testing.assert_allclose(np.asarray(new_rv), np.asarray(rv_ref), rtol=1e-4, atol=1e-5)

    # ---- case 2: force the two-pass tiled path with a ragged HW tile --------
    # HW = 300 (not a multiple of 128) and tiny tiles -> grid (2, 2, 3):
    # exercises channel split, batch/HW accumulation, masked ragged stats tile
    # and masked edge output writes.
    N2, C2, H2, W2 = 2, 16, 15, 20
    x2 = jax.random.normal(k3, (N2, C2, H2, W2), dtype=jnp.float32)
    w2 = jnp.linspace(0.5, 1.5, C2, dtype=jnp.float32)
    b2 = jnp.linspace(-1.0, 1.0, C2, dtype=jnp.float32)
    rm2 = jnp.zeros((C2,), dtype=jnp.float32)
    rv2 = jnp.ones((C2,), dtype=jnp.float32)

    y2, new_rm2, new_rv2 = batch_norm_train(
        x2, w2, b2, rm2, rv2, momentum=momentum, eps=eps,
        fuse=False, target_block_bytes=8 * 128 * 4)
    jax.block_until_ready((y2, new_rm2, new_rv2))

    y2_ref = _reference(x2, w2, b2, eps)
    np.testing.assert_allclose(np.asarray(y2), np.asarray(y2_ref), rtol=1e-4, atol=1e-4)
    mean2_ref = jnp.mean(x2, axis=(0, 2, 3))
    rm2_ref = (1.0 - momentum) * rm2 + momentum * mean2_ref
    np.testing.assert_allclose(np.asarray(new_rm2), np.asarray(rm2_ref), rtol=1e-4, atol=1e-5)

    # TODO(synk): num_batches_tracked (and the momentum=None cumulative-average
    # path it drives) is host-side bookkeeping in PyTorch with no on-device
    # compute; omitted here.
    print("KERNEL_OK")
</pallas_src>

<mosaic_0001>
module attributes {stable_mosaic.version = 11 : i64} {
  func.func @_fused_kernel(%arg0: i32, %arg1: memref<2x4x256xf32, #tpu.memory_space<vmem>>, %arg2: memref<4x1xf32, #tpu.memory_space<vmem>>, %arg3: memref<4x1xf32, #tpu.memory_space<vmem>>, %arg4: memref<2x4x256xf32, #tpu.memory_space<vmem>>, %arg5: memref<4x1xf32, #tpu.memory_space<vmem>>, %arg6: memref<4x1xf32, #tpu.memory_space<vmem>>) attributes {dimension_semantics = [#tpu.dimension_semantics<parallel>], iteration_bounds = array<i64: 1>, scalar_prefetch = 0 : i64, scratch_operands = 0 : i64, tpu.core_type = #tpu.core_type<tc>, window_params = [{transform_indices = @transform_0, window_bounds = array<i64: 2, 4, 256>}, {transform_indices = @transform_1, window_bounds = array<i64: 4, 1>}, {transform_indices = @transform_2, window_bounds = array<i64: 4, 1>}, {transform_indices = @transform_3, window_bounds = array<i64: 2, 4, 256>}, {transform_indices = @transform_4, window_bounds = array<i64: 4, 1>}, {transform_indices = @transform_5, window_bounds = array<i64: 4, 1>}]} {
    %c0 = arith.constant 0 : index
    %c0_0 = arith.constant 0 : index
    %c0_1 = arith.constant 0 : index
    %0 = vector.load %arg1[%c0, %c0_0, %c0_1] : memref<2x4x256xf32, #tpu.memory_space<vmem>>, vector<2x4x256xf32>
    %cst = arith.constant dense<0.000000e+00> : vector<4x256xf32>
    %1 = vector.multi_reduction <add>, %0, %cst [0] : vector<2x4x256xf32> to vector<4x256xf32>
    %cst_2 = arith.constant dense<0.000000e+00> : vector<4xf32>
    %2 = vector.multi_reduction <add>, %1, %cst_2 [1] : vector<4x256xf32> to vector<4xf32>
    %3 = vector.shape_cast %2 : vector<4xf32> to vector<4x1xf32>
    %cst_3 = arith.constant 0.001953125 : f32
    %4 = vector.broadcast %cst_3 : f32 to vector<4x1xf32>
    %5 = arith.mulf %3, %4 : vector<4x1xf32>
    %6 = vector.shape_cast %5 : vector<4x1xf32> to vector<1x4x1xf32>
    %7 = vector.broadcast %6 : vector<1x4x1xf32> to vector<2x4x256xf32>
    %8 = arith.subf %0, %7 : vector<2x4x256xf32>
    %9 = arith.mulf %8, %8 : vector<2x4x256xf32>
    %cst_4 = arith.constant dense<0.000000e+00> : vector<4x256xf32>
    %10 = vector.multi_reduction <add>, %9, %cst_4 [0] : vector<2x4x256xf32> to vector<4x256xf32>
    %cst_5 = arith.constant dense<0.000000e+00> : vector<4xf32>
    %11 = vector.multi_reduction <add>, %10, %cst_5 [1] : vector<4x256xf32> to vector<4xf32>
    %12 = vector.shape_cast %11 : vector<4xf32> to vector<4x1xf32>
    %cst_6 = arith.constant 0.001953125 : f32
    %13 = vector.broadcast %cst_6 : f32 to vector<4x1xf32>
    %14 = arith.mulf %12, %13 : vector<4x1xf32>
    %c0_7 = arith.constant 0 : index
    %c0_8 = arith.constant 0 : index
    %15 = vector.load %arg2[%c0_7, %c0_8] : memref<4x1xf32, #tpu.memory_space<vmem>>, vector<4x1xf32>
    %cst_9 = arith.constant 9.99999974E-6 : f32
    %16 = vector.broadcast %cst_9 : f32 to vector<4x1xf32>
    %17 = arith.addf %14, %16 : vector<4x1xf32>
    %18 = math.rsqrt %17 : vector<4x1xf32>
    %19 = arith.mulf %15, %18 : vector<4x1xf32>
    %c0_10 = arith.constant 0 : index
    %c0_11 = arith.constant 0 : index
    %20 = vector.load %arg3[%c0_10, %c0_11] : memref<4x1xf32, #tpu.memory_space<vmem>>, vector<4x1xf32>
    %21 = vector.shape_cast %19 : vector<4x1xf32> to vector<1x4x1xf32>
    %22 = vector.broadcast %21 : vector<1x4x1xf32> to vector<2x4x256xf32>
    %23 = arith.mulf %8, %22 : vector<2x4x256xf32>
    %24 = vector.shape_cast %20 : vector<4x1xf32> to vector<1x4x1xf32>
    %25 = vector.broadcast %24 : vector<1x4x1xf32> to vector<2x4x256xf32>
    %26 = arith.addf %23, %25 : vector<2x4x256xf32>
    %c0_12 = arith.constant 0 : index
    %c0_13 = arith.constant 0 : index
    %c0_14 = arith.constant 0 : index
    %27 = vector.load %arg4[%c0_12, %c0_13, %c0_14] : memref<2x4x256xf32, #tpu.memory_space<vmem>>, vector<2x4x256xf32>
    tpu.vector_store %arg4[%c0_12, %c0_13, %c0_14], %26 {strides = array<i32>} : memref<2x4x256xf32, #tpu.memory_space<vmem>>, vector<2x4x256xf32>,
    %c0_15 = arith.constant 0 : index
    %c0_16 = arith.constant 0 : index
    %28 = vector.load %arg5[%c0_15, %c0_16] : memref<4x1xf32, #tpu.memory_space<vmem>>, vector<4x1xf32>
    tpu.vector_store %arg5[%c0_15, %c0_16], %5 {strides = array<i32>} : memref<4x1xf32, #tpu.memory_space<vmem>>, vector<4x1xf32>,
    %c0_17 = arith.constant 0 : index
    %c0_18 = arith.constant 0 : index
    %29 = vector.load %arg6[%c0_17, %c0_18] : memref<4x1xf32, #tpu.memory_space<vmem>>, vector<4x1xf32>
    tpu.vector_store %arg6[%c0_17, %c0_18], %14 {strides = array<i32>} : memref<4x1xf32, #tpu.memory_space<vmem>>, vector<4x1xf32>,
    return
  }
  func.func @transform_0(%arg0: i32) -> (i32, i32, i32) {
    %c0_i32 = arith.constant 0 : i32
    %c0_i32_0 = arith.constant 0 : i32
    %c0_i32_1 = arith.constant 0 : i32
    return %c0_i32, %arg0, %c0_i32_0 : i32, i32, i32
  }
  func.func @transform_1(%arg0: i32) -> (i32, i32) {
    %c0_i32 = arith.constant 0 : i32
    %c0_i32_0 = arith.constant 0 : i32
    return %arg0, %c0_i32 : i32, i32
  }
  func.func @transform_2(%arg0: i32) -> (i32, i32) {
    %c0_i32 = arith.constant 0 : i32
    %c0_i32_0 = arith.constant 0 : i32
    return %arg0, %c0_i32 : i32, i32
  }
  func.func @transform_3(%arg0: i32) -> (i32, i32, i32) {
    %c0_i32 = arith.constant 0 : i32
    %c0_i32_0 = arith.constant 0 : i32
    %c0_i32_1 = arith.constant 0 : i32
    return %c0_i32, %arg0, %c0_i32_0 : i32, i32, i32
  }
  func.func @transform_4(%arg0: i32) -> (i32, i32) {
    %c0_i32 = arith.constant 0 : i32
    %c0_i32_0 = arith.constant 0 : i32
    return %arg0, %c0_i32 : i32, i32
  }
  func.func @transform_5(%arg0: i32) -> (i32, i32) {
    %c0_i32 = arith.constant 0 : i32
    %c0_i32_0 = arith.constant 0 : i32
    return %arg0, %c0_i32 : i32, i32
  }
}

</mosaic_0001>

<bundles_post_ra>
// kernel: tpu_custom_call.1
= control target key start
LH: loop header
LB: loop body
LE: loop exit
PB: predicated region body
PF: predicated region fallthrough
CT: control target
= control target key end

     0   :  { %11 = vsyncpa [#allocation3], 0  ;;  %s299_s0 = inlined_call_operand.hbm [shape: f32[2,4,256], index: 0, kind: input, shape index: {}]   ;;  %s300_s1 = inlined_call_operand.vmem [shape: f32[4,1], index: 1, kind: input, shape index: {}]   ;;  %s301_s2 = inlined_call_operand.vmem [shape: f32[4,1], index: 2, kind: input, shape index: {}]   ;;  %s302_s3 = inlined_call_operand.hbm [shape: f32[2,4,256], index: 3, kind: output, shape index: {0}]   ;;  %s303_s4 = inlined_call_operand.vmem [shape: f32[4,1], index: 4, kind: output, shape index: {1}]   ;;  %s304_s5 = inlined_call_operand.vmem [shape: f32[4,1], index: 5, kind: output, shape index: {2}]  }
   0x1   :  { %12 = vsyncpa [#allocation4], 0  ;;  %s207_s18 = smov [#allocation2]   ;;  %s159_s22 = scalar_lea.hbm %s299_s0, 256 }
   0x2   :  { %s18_s19 = sshll.u32 %s207_s18, 4  ;;  %p160_p0 = scmp.ne.s32.totalorder %s299_s0, %s159_s22  ;;  %s19_s19 = int_to_ptr.vmem [resolvable:$true] %s18_s19 }
   0x3   :  { %p163_p1 = scmp.lt.u32.totalorder %s159_s22, %s299_s0 }
   0x5   :  { %p165_p2 = pnand %p163_p1, %p160_p0 }
   0x7   :  { %168 = shalt.err (!%p165_p2)
}
   0x8   :  { %s169_s27 = scalar_lea.vmem %s19_s19, 256  ;;  %p174_p4 = scmp.lt.s32.totalorder %s19_s19, %s19_s19 }
   0x9   :  { %p170_p3 = scmp.ne.s32.totalorder %s19_s19, %s169_s27  ;;  %p175_p5 = scmp.lt.s32.totalorder %s169_s27, %s169_s27 }
   0xb   :  { %p176_p6 = por %p175_p5, %p174_p4 }
   0xd   :  { %p177_p7 = pnand %p176_p6, %p170_p3 }
   0xf   :  { %180 = shalt.err (!%p177_p7)
}
  0x10   :  { %s208_s28 = smov 128   ;;  %s209_s29 = smov 8  }
  0x11   :  { %24 = dma.hbm_to_vmem [thread:$0]  %s299_s0, 256, %s19_s19, [#allocation3], %s208_s28, %s208_s28, %s209_s29  }
  0x12   :  { %203 = dma.done.wait [#allocation3], 256  }
  0x13   :  { %204 = vsyncadd [#allocation3], 4294967040  ;;  %vm40_vm0 = vcmask 1043456   ;;  %v32_v0 = vld [vmem:[#allocation2] sm:$0xff]  ;;  %v33_v1 = vld [vmem:[#allocation2 + $0x8] sm:$0xff]  ;;  %v57_v15 = vlaneseq  ;;  %vm119_vm1 = vcmask 3072  }
  0x14   :  { %v36_v2 = vcombine.high %v32_v0, %v32_v0  ;;  %v37_v3 = vcombine.high %v33_v1, %v33_v1  ;;  %v41_v4 = vsel %vm40_vm0, %v32_v0, 0.0  ;;  %v42_v5 = vsel %vm40_vm0, %v33_v1, 0.0  ;;  %v84_v41 = vld [vmem:[%s300_s1] sm:$0xf]  ;;  %s212_s13 = smov [#allocation5]  }
  0x15   :  { %v43_v6 = vadd.f32 %v42_v5, %v41_v4  ;;  %v210_v13 = vmov 839922192   ;;  %v58_v17 = vshrl.u32 %v57_v15, 7  ;;  %v211_v37 = vmov 0   ;;  %v88_v44 = vld [vmem:[%s301_s2] sm:$0xf] }
  0x16   :  { %v44_v7 = vsel %vm40_vm0, %v36_v2, 0.0  ;;  %v45_v8 = vsel %vm40_vm0, %v37_v3, 0.0  ;;  %v55_v14 = vunpack.c.l.s4 %v210_v13  ;;  %153 = vset.pattern.permute.xlu1 %v211_v37  ;;  %154 = vset.pattern.permute.xlu0 %v211_v37  ;;  %s127_s14 = sshll.u32 %s212_s13, 4  ;;  %s128_s14 = int_to_ptr.vmem [resolvable:$true] %s127_s14 }
  0x17   :  { %v46_v9 = vadd.f32 %v45_v8, %v44_v7  ;;  %v47_v10 = vsel %vm40_vm0, %v43_v6, 0.0  ;;  %s181_s1 = scalar_lea.vmem %s128_s14, 256  ;;  %p186_p9 = scmp.lt.s32.totalorder %s128_s14, %s128_s14 }
  0x18   :  { %v56_v16 = vunpack.c.0.s8 %v55_v14  ;;  %p182_p8 = scmp.ne.s32.totalorder %s128_s14, %s181_s1  ;;  %p187_p10 = scmp.lt.s32.totalorder %s181_s1, %s181_s1 }
  0x19   :  { %v48_v11 = vsel %vm40_vm0, %v46_v9, 0.0 }
  0x1a   :  { %v49_v12 = vadd.f32 %v48_v11, %v47_v10  ;;  %v59_v18 = vsub.s32 %v56_v16, %v58_v17  ;;  %p188_p11 = por %p187_p10, %p186_p9 }
  0x1c   :  { %50 = vadd.xlane.f32.xlu0 %v49_v12  ;;  %p189_p12 = pnand %p188_p11, %p182_p8 }
  0xa9   :  { %v51_v19 = vpop.xlane.xlu0 %50 }
  0xaa   :  { %v52_v20 = vmul.f32 0.001953125, %v51_v19 }
  0xac   :  { %v60_v21 = vrot.slane %v52_v20, %v59_v18  ;;  %120 = vst.msk [vmem:[%s303_s4] sm:$0xf] %vm119_vm1, %v52_v20 }
  0xae   :  { %v62_v22 = vsub.f32 %v32_v0, %v60_v21  ;;  %v63_v23 = vsub.f32 %v33_v1, %v60_v21 }
  0xb0   :  { %v64_v24 = vmul.f32 %v62_v22, %v62_v22  ;;  %v65_v25 = vmul.f32 %v63_v23, %v63_v23 }
  0xb2   :  { %v68_v26 = vcombine.high %v64_v24, %v64_v24  ;;  %v69_v27 = vcombine.high %v65_v25, %v65_v25  ;;  %v72_v28 = vsel %vm40_vm0, %v64_v24, 0.0  ;;  %v73_v29 = vsel %vm40_vm0, %v65_v25, 0.0 }
  0xb3   :  { %v74_v30 = vadd.f32 %v73_v29, %v72_v28 }
  0xb4   :  { %v75_v31 = vsel %vm40_vm0, %v68_v26, 0.0  ;;  %v76_v32 = vsel %vm40_vm0, %v69_v27, 0.0 }
  0xb5   :  { %v77_v33 = vadd.f32 %v76_v32, %v75_v31  ;;  %v78_v34 = vsel %vm40_vm0, %v74_v30, 0.0 }
  0xb7   :  { %v79_v35 = vsel %vm40_vm0, %v77_v33, 0.0 }
  0xb8   :  { %v80_v36 = vadd.f32 %v79_v35, %v78_v34 }
  0xba   :  { %81 = vadd.xlane.f32.xlu0 %v80_v36 }
 0x147   :  { %v82_v38 = vpop.xlane.xlu0 %81 }
 0x148   :  { %v83_v39 = vmul.f32 0.001953125, %v82_v38 }
 0x14a   :  { %v85_v40 = vadd.f32 1e-05, %v83_v39  ;;  %121 = vst.msk [vmem:[%s304_s5] sm:$0xf] %vm119_vm1, %v83_v39 }
 0x14c   :  { %157 = vrsqrt.f32 %v85_v40 }
 0x156   :  { %v158_v42 = vpop.eup %157 }
 0x157   :  { %v87_v43 = vmul.f32 %v158_v42, %v84_v41 }
 0x159   :  { %91 = vperm.xlu1 %153, %v87_v43  }
 0x15d   :  { %105 = vperm.xlu1 %153, %v88_v44  }
 0x1d8   :  { %v92_v45 = vpop.permute.xlu1 %91 }
 0x1d9   :  { %v99_v46 = vrot.slane %v92_v45, %v59_v18 }
 0x1db   :  { %v101_v48 = vmul.f32 %v99_v46, %v62_v22  ;;  %v102_v49 = vmul.f32 %v99_v46, %v63_v23 }
 0x1dc   :  { %v106_v47 = vpop.permute.xlu1 %105 }
 0x1dd   :  { %v113_v50 = vrot.slane %v106_v47, %v59_v18 }
 0x1df   :  { %v115_v51 = vadd.f32 %v113_v50, %v101_v48  ;;  %v116_v52 = vadd.f32 %v113_v50, %v102_v49 }
 0x1e1   :  { %117 = vst [vmem:[#allocation5] sm:$0xff] %v115_v51  ;;  %118 = vst [vmem:[#allocation5 + $0x8] sm:$0xff] %v116_v52 }
 0x1e2   :  { %192 = shalt.err (!%p189_p12)
}
 0x1e3   :  { %s193_s15 = scalar_lea.hbm %s302_s3, 256 }
 0x1e4   :  { %p194_p13 = scmp.ne.s32.totalorder %s302_s3, %s193_s15  ;;  %p197_p0 = scmp.lt.u32.totalorder %s193_s15, %s302_s3 }
 0x1e6   :  { %p199_p1 = pnand %p197_p0, %p194_p13 }
 0x1e8   :  { %202 = shalt.err (!%p199_p1)
}
 0x1e9   :  { %133 = dma.vmem_to_hbm [thread:$0]  %s128_s14, 256, %s302_s3, [#allocation4], %s208_s28, %s208_s28, %s209_s29  }
 0x1ea   :  { %205 = dma.done.wait [#allocation4], 256  }
 0x1eb   :  { %206 = vsyncadd [#allocation4], 4294967040 }
 0x1ec   :  { %145 = vsyncpa [#allocation3], 1 }
 0x1ed   :  { %146 = vsyncpa [#allocation4], 1 }

</bundles_post_ra>
